<compile_context>
chip_gen: v7x
topology: tpu7x:2x2x1
jax: 0.10.0
libtpu: 0.0.40
codegen_flags: <defaults>
</compile_context>

<pallas_src>
import jax
import jax.numpy as jnp
from jax.experimental import pallas as pl
from jax.experimental.pallas import tpu as pltpu

_FRAC_BITS = 16
_INT_BITS = 16
_BN_EPS = 1e-5
_ACT_SCALE = float(2 ** _FRAC_BITS)              # 65536.0 (exact power of two)
_ACT_INV_SCALE = float(2.0 ** -_FRAC_BITS)       # 2**-16
_ACT_MAX = float(2.0 ** (_INT_BITS - 1) - 1.0)   # 32767.0
_VMEM_LIMIT = 32 * 1024 * 1024                   # safe on v5e/v6e and v7x (64 MiB phys)


def _relu_quant(v):
    # ReLU + DeepShift round_to_fixed(16, 16).  Post-ReLU values are >= 0, so the
    # lower clamp is dead; the power-of-two divide is an exact multiply.
    v = jnp.maximum(v, 0.0)
    return jnp.minimum(jnp.floor(v * _ACT_SCALE) * _ACT_INV_SCALE, _ACT_MAX)


def _conv_tile(x_ref, b, t1, t2, wa, wb):
    """relu + quant + MXU tap-gather + fused shift-conv for one image."""
    a = _relu_quant(x_ref[b])                                        # (C_in, H*W)
    taps1 = jnp.dot(a, t1, preferred_element_type=jnp.float32)       # (C_in, Ho*Wo)
    taps2 = jnp.dot(a, t2, preferred_element_type=jnp.float32)       # (C_in, Ho*Wo)
    return (jnp.dot(wa, taps1, preferred_element_type=jnp.float32)
            + jnp.dot(wb, taps2, preferred_element_type=jnp.float32))  # (C_out, Ho*Wo)


def _stats_kernel(x_ref, t1_ref, t2_ref, wa_ref, wb_ref, stats_ref):
    """Pass 1: per-step partial BN sums / sums-of-squares (no y writeback)."""
    t1 = t1_ref[...]
    t2 = t2_ref[...]
    wa = wa_ref[...]
    wb = wb_ref[...]
    c_out = wa.shape[0]
    s = jnp.zeros((c_out, 1), jnp.float32)
    ss = jnp.zeros((c_out, 1), jnp.float32)
    for b in range(x_ref.shape[0]):          # static unroll over images in this step
        y = _conv_tile(x_ref, b, t1, t2, wa, wb)
        s = s + jnp.sum(y, axis=1, keepdims=True)
        ss = ss + jnp.sum(y * y, axis=1, keepdims=True)
    stats_ref[0, :, 0:1] = s
    stats_ref[0, :, 1:2] = ss


def _apply_kernel(x_ref, t1_ref, t2_ref, wa_ref, wb_ref, scale_ref, offset_ref, o_ref):
    """Pass 2: recompute the cheap conv from x and write BN'd output in final layout."""
    t1 = t1_ref[...]
    t2 = t2_ref[...]
    wa = wa_ref[...]
    wb = wb_ref[...]
    scale = scale_ref[...]                   # (C_out, 1), broadcasts over lanes
    offset = offset_ref[...]
    for b in range(x_ref.shape[0]):
        y = _conv_tile(x_ref, b, t1, t2, wa, wb)
        o_ref[b] = y * scale + offset


def _shift_weight(shift, sign, weight_bits=5):
    """Conv2dShift effective weight (tiny parameter prep, plain JAX glue)."""
    lo = -1.0 * (2 ** (weight_bits - 1) - 2)           # -14
    s = jnp.clip(shift, lo, 0.0)                       # ste.clamp
    w = (2.0 ** jnp.round(s)) * jnp.sign(jnp.round(sign))
    return w[:, :, 0, 0].astype(jnp.float32)           # (C_half, C_in)


def _selection_matrices(H, W):
    """0/1 matrices mapping flattened (H*W) positions to the two stride-2 tap sets."""
    Ho, Wo = H // 2, W // 2
    m = Ho * Wo
    p = jnp.arange(m)
    i = p // Wo
    j = p % Wo
    q = jnp.arange(H * W)[:, None]
    t1 = (q == (2 * i * W + 2 * j)[None, :]).astype(jnp.float32)            # even/even
    t2 = (q == ((2 * i + 1) * W + (2 * j + 1))[None, :]).astype(jnp.float32)  # odd/odd
    return t1, t2


def _images_per_step(n, per_image_bytes, target_bytes=1 << 20, max_unroll=8):
    """Images per grid step: amortize ~0.35us/step, keep >=2 steps for v7x megacore."""
    want = max(1, min(max_unroll, target_bytes // max(per_image_bytes, 1)))
    best = 1
    for d in range(1, n + 1):
        if n % d != 0 or d > want:
            continue
        if n >= 2 and n // d < 2:
            continue
        best = max(best, d)
    return best


@jax.jit
def factorized_reduce(x, shift1, sign1, shift2, sign2, gamma, beta):
    """x: (N, C_in, H, W) float32 NCHW, matching the PyTorch module."""
    N, C_in, H, W = x.shape
    assert H % 2 == 0 and W % 2 == 0, "torch.cat requires matching halves (H, W even)"
    Ho, Wo = H // 2, W // 2
    HW = H * W
    M_img = Ho * Wo
    M_total = N * M_img

    # --- parameter prep (tiny glue): zero-padded shift weights -> one add, no concat
    w1 = _shift_weight(shift1, sign1)                  # (C_half, C_in)
    w2 = _shift_weight(shift2, sign2)                  # (C_half, C_in)
    C_half = w1.shape[0]
    C_out = 2 * C_half
    zero = jnp.zeros((C_half, C_in), jnp.float32)
    wa = jnp.concatenate([w1, zero], axis=0)           # (C_out, C_in): conv_1 rows
    wb = jnp.concatenate([zero, w2], axis=0)           # (C_out, C_in): conv_2 rows

    t1, t2 = _selection_matrices(H, W)                 # (HW, M_img) each, VMEM-resident

    # Free bitcast: the kernels read x directly (no XLA relayout pass over x).
    xf = x.reshape(N, C_in, HW)

    bn_img = _images_per_step(N, C_in * HW * 4)
    num_steps = N // bn_img

    x_spec = pl.BlockSpec((bn_img, C_in, HW), lambda i: (i, 0, 0))
    t_spec = pl.BlockSpec((HW, M_img), lambda i: (0, 0))       # resident selection mats
    w_spec = pl.BlockSpec((C_out, C_in), lambda i: (0, 0))     # resident weights
    c_spec = pl.BlockSpec((C_out, 1), lambda i: (0, 0))        # resident scale/offset
    cparams = pltpu.CompilerParams(
        dimension_semantics=("parallel",), vmem_limit_bytes=_VMEM_LIMIT)

    # --- pass 1: partial BN stats only (grid over image groups, fully parallel) ---
    stats = pl.pallas_call(
        _stats_kernel,
        out_shape=jax.ShapeDtypeStruct((num_steps, C_out, 2), jnp.float32),
        grid=(num_steps,),
        in_specs=[x_spec, t_spec, t_spec, w_spec, w_spec],
        out_specs=pl.BlockSpec((1, C_out, 2), lambda i: (i, 0, 0)),
        compiler_params=cparams,
    )(xf, t1, t2, wa, wb)

    # --- finalize BN stats (tiny glue): fold into per-channel scale / offset ---
    # NOTE: E[y^2]-E[y]^2 in f32 can cancel for channels with |mean| >> std.
    sums = jnp.sum(stats, axis=0)                                   # (C_out, 2)
    mean = sums[:, 0] / M_total
    var = jnp.maximum(sums[:, 1] / M_total - mean * mean, 0.0)      # biased var
    inv = jax.lax.rsqrt(var + _BN_EPS)
    g = gamma.astype(jnp.float32)
    scale = (g * inv).reshape(C_out, 1)
    offset = (beta.astype(jnp.float32) - mean * g * inv).reshape(C_out, 1)

    # --- pass 2: recompute conv from x, apply BN, write final layout directly ---
    out = pl.pallas_call(
        _apply_kernel,
        out_shape=jax.ShapeDtypeStruct((N, C_out, M_img), jnp.float32),
        grid=(num_steps,),
        in_specs=[x_spec, t_spec, t_spec, w_spec, w_spec, c_spec, c_spec],
        out_specs=pl.BlockSpec((bn_img, C_out, M_img), lambda i: (i, 0, 0)),
        compiler_params=cparams,
    )(xf, t1, t2, wa, wb, scale, offset)

    # Free bitcast back to NCHW (kernel already produced the final channel/row order).
    return out.reshape(N, C_out, Ho, Wo)


def _reference(x, shift1, sign1, shift2, sign2, gamma, beta):
    """Pure-JAX reference mirroring the PyTorch forward."""
    def quant(v):
        return jnp.clip(jnp.floor(v * _ACT_SCALE) * _ACT_INV_SCALE,
                        -2.0 ** (_INT_BITS - 1), _ACT_MAX)
    a = quant(jnp.maximum(x, 0.0))
    w1 = _shift_weight(shift1, sign1)
    w2 = _shift_weight(shift2, sign2)
    y1 = jnp.einsum('oc,nchw->nohw', w1, a[:, :, 0::2, 0::2])
    y2 = jnp.einsum('oc,nchw->nohw', w2, a[:, :, 1::2, 1::2])
    y = jnp.concatenate([y1, y2], axis=1)
    mean = y.mean(axis=(0, 2, 3), keepdims=True)
    var = ((y - mean) ** 2).mean(axis=(0, 2, 3), keepdims=True)
    yhat = (y - mean) * jax.lax.rsqrt(var + _BN_EPS)
    return yhat * gamma.reshape(1, -1, 1, 1) + beta.reshape(1, -1, 1, 1)


if __name__ == "__main__":
    key = jax.random.PRNGKey(0)
    N, C_in, H, W = 2, 4, 16, 16
    C_out = 8
    C_half = C_out // 2

    k1, k2, k3, k4, k5, k6, k7 = jax.random.split(key, 7)
    x = jax.random.normal(k1, (N, C_in, H, W), jnp.float32)

    # parameter init matching reset_parameters(): shift ~ U(-10,-1), sign ~ U(-1,1);
    # BN affine perturbed away from identity to exercise the scale/offset path.
    shift1 = jax.random.uniform(k2, (C_half, C_in, 1, 1), jnp.float32, -10.0, -1.0)
    sign1 = jax.random.uniform(k3, (C_half, C_in, 1, 1), jnp.float32, -1.0, 1.0)
    shift2 = jax.random.uniform(k4, (C_half, C_in, 1, 1), jnp.float32, -10.0, -1.0)
    sign2 = jax.random.uniform(k5, (C_half, C_in, 1, 1), jnp.float32, -1.0, 1.0)
    gamma = 1.0 + 0.1 * jax.random.normal(k6, (C_out,), jnp.float32)
    beta = 0.1 * jax.random.normal(k7, (C_out,), jnp.float32)

    out = factorized_reduce(x, shift1, sign1, shift2, sign2, gamma, beta)
    out = jax.block_until_ready(out)
    assert out.shape == (N, C_out, H // 2, W // 2), out.shape

    ref = _reference(x, shift1, sign1, shift2, sign2, gamma, beta)
    assert jnp.allclose(out, ref, rtol=5e-3, atol=5e-3), \
        float(jnp.max(jnp.abs(out - ref)))

    print("KERNEL_OK")
</pallas_src>

<mosaic_0001>
module attributes {stable_mosaic.version = 11 : i64} {
  func.func @_stats_kernel(%arg0: i32, %arg1: memref<1x4x256xf32, #tpu.memory_space<vmem>>, %arg2: memref<256x64xf32, #tpu.memory_space<vmem>>, %arg3: memref<256x64xf32, #tpu.memory_space<vmem>>, %arg4: memref<8x4xf32, #tpu.memory_space<vmem>>, %arg5: memref<8x4xf32, #tpu.memory_space<vmem>>, %arg6: memref<1x8x2xf32, #tpu.memory_space<vmem>>) attributes {dimension_semantics = [#tpu.dimension_semantics<parallel>], iteration_bounds = array<i64: 2>, scalar_prefetch = 0 : i64, scratch_operands = 0 : i64, tpu.core_type = #tpu.core_type<tc>, window_params = [{transform_indices = @transform_0, window_bounds = array<i64: 1, 4, 256>}, {pipeline_mode = #tpu.pipeline_mode<synchronous>, transform_indices = @transform_1, window_bounds = array<i64: 256, 64>}, {pipeline_mode = #tpu.pipeline_mode<synchronous>, transform_indices = @transform_2, window_bounds = array<i64: 256, 64>}, {pipeline_mode = #tpu.pipeline_mode<synchronous>, transform_indices = @transform_3, window_bounds = array<i64: 8, 4>}, {pipeline_mode = #tpu.pipeline_mode<synchronous>, transform_indices = @transform_4, window_bounds = array<i64: 8, 4>}, {transform_indices = @transform_5, window_bounds = array<i64: 1, 8, 2>}]} {
    %c0 = arith.constant 0 : index
    %c0_0 = arith.constant 0 : index
    %0 = vector.load %arg2[%c0, %c0_0] : memref<256x64xf32, #tpu.memory_space<vmem>>, vector<256x64xf32>
    %c0_1 = arith.constant 0 : index
    %c0_2 = arith.constant 0 : index
    %1 = vector.load %arg3[%c0_1, %c0_2] : memref<256x64xf32, #tpu.memory_space<vmem>>, vector<256x64xf32>
    %c0_3 = arith.constant 0 : index
    %c0_4 = arith.constant 0 : index
    %2 = vector.load %arg4[%c0_3, %c0_4] : memref<8x4xf32, #tpu.memory_space<vmem>>, vector<8x4xf32>
    %c0_5 = arith.constant 0 : index
    %c0_6 = arith.constant 0 : index
    %3 = vector.load %arg5[%c0_5, %c0_6] : memref<8x4xf32, #tpu.memory_space<vmem>>, vector<8x4xf32>
    %cst = arith.constant 0.000000e+00 : f32
    %4 = vector.broadcast %cst : f32 to vector<8x1xf32>
    %cst_7 = arith.constant 0.000000e+00 : f32
    %5 = vector.broadcast %cst_7 : f32 to vector<8x1xf32>
    %c0_8 = arith.constant 0 : index
    %c0_9 = arith.constant 0 : index
    %c0_10 = arith.constant 0 : index
    %6 = vector.load %arg1[%c0_8, %c0_9, %c0_10] : memref<1x4x256xf32, #tpu.memory_space<vmem>>, vector<1x4x256xf32>
    %7 = vector.shape_cast %6 : vector<1x4x256xf32> to vector<4x256xf32>
    %cst_11 = arith.constant 0.000000e+00 : f32
    %8 = vector.broadcast %cst_11 : f32 to vector<4x256xf32>
    %9 = arith.maximumf %7, %8 : vector<4x256xf32>
    %cst_12 = arith.constant 6.553600e+04 : f32
    %10 = vector.broadcast %cst_12 : f32 to vector<4x256xf32>
    %11 = arith.mulf %9, %10 : vector<4x256xf32>
    %12 = math.floor %11 : vector<4x256xf32>
    %cst_13 = arith.constant 1.52587891E-5 : f32
    %13 = vector.broadcast %cst_13 : f32 to vector<4x256xf32>
    %14 = arith.mulf %12, %13 : vector<4x256xf32>
    %cst_14 = arith.constant 3.276700e+04 : f32
    %15 = vector.broadcast %cst_14 : f32 to vector<4x256xf32>
    %16 = arith.minimumf %14, %15 : vector<4x256xf32>
    %cst_15 = arith.constant dense<0.000000e+00> : vector<4x64xf32>
    %17 = tpu.matmul %16, %0, %cst_15 {dimension_numbers = #tpu.dot_dimension_numbers<[1], [0], [0], [1], [0, 0, 1, 1], [], []>} : vector<4x256xf32>, vector<256x64xf32>, vector<4x64xf32> -> vector<4x64xf32>
    %cst_16 = arith.constant dense<0.000000e+00> : vector<4x64xf32>
    %18 = tpu.matmul %16, %1, %cst_16 {dimension_numbers = #tpu.dot_dimension_numbers<[1], [0], [0], [1], [0, 0, 1, 1], [], []>} : vector<4x256xf32>, vector<256x64xf32>, vector<4x64xf32> -> vector<4x64xf32>
    %cst_17 = arith.constant dense<0.000000e+00> : vector<8x64xf32>
    %19 = tpu.matmul %2, %17, %cst_17 {dimension_numbers = #tpu.dot_dimension_numbers<[1], [0], [0], [1], [0, 0, 1, 1], [], []>} : vector<8x4xf32>, vector<4x64xf32>, vector<8x64xf32> -> vector<8x64xf32>
    %cst_18 = arith.constant dense<0.000000e+00> : vector<8x64xf32>
    %20 = tpu.matmul %3, %18, %cst_18 {dimension_numbers = #tpu.dot_dimension_numbers<[1], [0], [0], [1], [0, 0, 1, 1], [], []>} : vector<8x4xf32>, vector<4x64xf32>, vector<8x64xf32> -> vector<8x64xf32>
    %21 = arith.addf %19, %20 : vector<8x64xf32>
    %cst_19 = arith.constant dense<0.000000e+00> : vector<8xf32>
    %22 = vector.multi_reduction <add>, %21, %cst_19 [1] : vector<8x64xf32> to vector<8xf32>
    %23 = vector.shape_cast %22 : vector<8xf32> to vector<8x1xf32>
    %24 = arith.addf %4, %23 : vector<8x1xf32>
    %25 = arith.mulf %21, %21 : vector<8x64xf32>
    %cst_20 = arith.constant dense<0.000000e+00> : vector<8xf32>
    %26 = vector.multi_reduction <add>, %25, %cst_20 [1] : vector<8x64xf32> to vector<8xf32>
    %27 = vector.shape_cast %26 : vector<8xf32> to vector<8x1xf32>
    %28 = arith.addf %5, %27 : vector<8x1xf32>
    %c0_21 = arith.constant 0 : index
    %c0_22 = arith.constant 0 : index
    %c0_23 = arith.constant 0 : index
    %29 = vector.load %arg6[%c0_21, %c0_22, %c0_23] : memref<1x8x2xf32, #tpu.memory_space<vmem>>, vector<1x8x1xf32>
    %30 = vector.shape_cast %29 : vector<1x8x1xf32> to vector<8x1xf32>
    %31 = vector.shape_cast %24 : vector<8x1xf32> to vector<1x8x1xf32>
    tpu.vector_store %arg6[%c0_21, %c0_22, %c0_23], %31 {strides = array<i32>} : memref<1x8x2xf32, #tpu.memory_space<vmem>>, vector<1x8x1xf32>,
    %c0_24 = arith.constant 0 : index
    %c0_25 = arith.constant 0 : index
    %c1 = arith.constant 1 : index
    %32 = vector.load %arg6[%c0_24, %c0_25, %c1] : memref<1x8x2xf32, #tpu.memory_space<vmem>>, vector<1x8x1xf32>
    %33 = vector.shape_cast %32 : vector<1x8x1xf32> to vector<8x1xf32>
    %34 = vector.shape_cast %28 : vector<8x1xf32> to vector<1x8x1xf32>
    tpu.vector_store %arg6[%c0_24, %c0_25, %c1], %34 {strides = array<i32>} : memref<1x8x2xf32, #tpu.memory_space<vmem>>, vector<1x8x1xf32>,
    return
  }
  func.func @transform_0(%arg0: i32) -> (i32, i32, i32) {
    %c0_i32 = arith.constant 0 : i32
    %c0_i32_0 = arith.constant 0 : i32
    %c0_i32_1 = arith.constant 0 : i32
    return %arg0, %c0_i32, %c0_i32_0 : i32, i32, i32
  }
  func.func @transform_1(%arg0: i32) -> (i32, i32) {
    %c0_i32 = arith.constant 0 : i32
    %c0_i32_0 = arith.constant 0 : i32
    %c0_i32_1 = arith.constant 0 : i32
    return %c0_i32, %c0_i32_0 : i32, i32
  }
  func.func @transform_2(%arg0: i32) -> (i32, i32) {
    %c0_i32 = arith.constant 0 : i32
    %c0_i32_0 = arith.constant 0 : i32
    %c0_i32_1 = arith.constant 0 : i32
    return %c0_i32, %c0_i32_0 : i32, i32
  }
  func.func @transform_3(%arg0: i32) -> (i32, i32) {
    %c0_i32 = arith.constant 0 : i32
    %c0_i32_0 = arith.constant 0 : i32
    %c0_i32_1 = arith.constant 0 : i32
    return %c0_i32, %c0_i32_0 : i32, i32
  }
  func.func @transform_4(%arg0: i32) -> (i32, i32) {
    %c0_i32 = arith.constant 0 : i32
    %c0_i32_0 = arith.constant 0 : i32
    %c0_i32_1 = arith.constant 0 : i32
    return %c0_i32, %c0_i32_0 : i32, i32
  }
  func.func @transform_5(%arg0: i32) -> (i32, i32, i32) {
    %c0_i32 = arith.constant 0 : i32
    %c0_i32_0 = arith.constant 0 : i32
    %c0_i32_1 = arith.constant 0 : i32
    return %arg0, %c0_i32, %c0_i32_0 : i32, i32, i32
  }
}

module attributes {stable_mosaic.version = 11 : i64} {
  func.func @_apply_kernel(%arg0: i32, %arg1: memref<1x4x256xf32, #tpu.memory_space<vmem>>, %arg2: memref<256x64xf32, #tpu.memory_space<vmem>>, %arg3: memref<256x64xf32, #tpu.memory_space<vmem>>, %arg4: memref<8x4xf32, #tpu.memory_space<vmem>>, %arg5: memref<8x4xf32, #tpu.memory_space<vmem>>, %arg6: memref<8x1xf32, #tpu.memory_space<vmem>>, %arg7: memref<8x1xf32, #tpu.memory_space<vmem>>, %arg8: memref<1x8x64xf32, #tpu.memory_space<vmem>>) attributes {dimension_semantics = [#tpu.dimension_semantics<parallel>], iteration_bounds = array<i64: 2>, scalar_prefetch = 0 : i64, scratch_operands = 0 : i64, tpu.core_type = #tpu.core_type<tc>, window_params = [{transform_indices = @transform_0, window_bounds = array<i64: 1, 4, 256>}, {pipeline_mode = #tpu.pipeline_mode<synchronous>, transform_indices = @transform_1, window_bounds = array<i64: 256, 64>}, {pipeline_mode = #tpu.pipeline_mode<synchronous>, transform_indices = @transform_2, window_bounds = array<i64: 256, 64>}, {pipeline_mode = #tpu.pipeline_mode<synchronous>, transform_indices = @transform_3, window_bounds = array<i64: 8, 4>}, {pipeline_mode = #tpu.pipeline_mode<synchronous>, transform_indices = @transform_4, window_bounds = array<i64: 8, 4>}, {pipeline_mode = #tpu.pipeline_mode<synchronous>, transform_indices = @transform_5, window_bounds = array<i64: 8, 1>}, {pipeline_mode = #tpu.pipeline_mode<synchronous>, transform_indices = @transform_6, window_bounds = array<i64: 8, 1>}, {transform_indices = @transform_7, window_bounds = array<i64: 1, 8, 64>}]} {
    %c0 = arith.constant 0 : index
    %c0_0 = arith.constant 0 : index
    %0 = vector.load %arg2[%c0, %c0_0] : memref<256x64xf32, #tpu.memory_space<vmem>>, vector<256x64xf32>
    %c0_1 = arith.constant 0 : index
    %c0_2 = arith.constant 0 : index
    %1 = vector.load %arg3[%c0_1, %c0_2] : memref<256x64xf32, #tpu.memory_space<vmem>>, vector<256x64xf32>
    %c0_3 = arith.constant 0 : index
    %c0_4 = arith.constant 0 : index
    %2 = vector.load %arg4[%c0_3, %c0_4] : memref<8x4xf32, #tpu.memory_space<vmem>>, vector<8x4xf32>
    %c0_5 = arith.constant 0 : index
    %c0_6 = arith.constant 0 : index
    %3 = vector.load %arg5[%c0_5, %c0_6] : memref<8x4xf32, #tpu.memory_space<vmem>>, vector<8x4xf32>
    %c0_7 = arith.constant 0 : index
    %c0_8 = arith.constant 0 : index
    %4 = vector.load %arg6[%c0_7, %c0_8] : memref<8x1xf32, #tpu.memory_space<vmem>>, vector<8x1xf32>
    %c0_9 = arith.constant 0 : index
    %c0_10 = arith.constant 0 : index
    %5 = vector.load %arg7[%c0_9, %c0_10] : memref<8x1xf32, #tpu.memory_space<vmem>>, vector<8x1xf32>
    %c0_11 = arith.constant 0 : index
    %c0_12 = arith.constant 0 : index
    %c0_13 = arith.constant 0 : index
    %6 = vector.load %arg1[%c0_11, %c0_12, %c0_13] : memref<1x4x256xf32, #tpu.memory_space<vmem>>, vector<1x4x256xf32>
    %7 = vector.shape_cast %6 : vector<1x4x256xf32> to vector<4x256xf32>
    %cst = arith.constant 0.000000e+00 : f32
    %8 = vector.broadcast %cst : f32 to vector<4x256xf32>
    %9 = arith.maximumf %7, %8 : vector<4x256xf32>
    %cst_14 = arith.constant 6.553600e+04 : f32
    %10 = vector.broadcast %cst_14 : f32 to vector<4x256xf32>
    %11 = arith.mulf %9, %10 : vector<4x256xf32>
    %12 = math.floor %11 : vector<4x256xf32>
    %cst_15 = arith.constant 1.52587891E-5 : f32
    %13 = vector.broadcast %cst_15 : f32 to vector<4x256xf32>
    %14 = arith.mulf %12, %13 : vector<4x256xf32>
    %cst_16 = arith.constant 3.276700e+04 : f32
    %15 = vector.broadcast %cst_16 : f32 to vector<4x256xf32>
    %16 = arith.minimumf %14, %15 : vector<4x256xf32>
    %cst_17 = arith.constant dense<0.000000e+00> : vector<4x64xf32>
    %17 = tpu.matmul %16, %0, %cst_17 {dimension_numbers = #tpu.dot_dimension_numbers<[1], [0], [0], [1], [0, 0, 1, 1], [], []>} : vector<4x256xf32>, vector<256x64xf32>, vector<4x64xf32> -> vector<4x64xf32>
    %cst_18 = arith.constant dense<0.000000e+00> : vector<4x64xf32>
    %18 = tpu.matmul %16, %1, %cst_18 {dimension_numbers = #tpu.dot_dimension_numbers<[1], [0], [0], [1], [0, 0, 1, 1], [], []>} : vector<4x256xf32>, vector<256x64xf32>, vector<4x64xf32> -> vector<4x64xf32>
    %cst_19 = arith.constant dense<0.000000e+00> : vector<8x64xf32>
    %19 = tpu.matmul %2, %17, %cst_19 {dimension_numbers = #tpu.dot_dimension_numbers<[1], [0], [0], [1], [0, 0, 1, 1], [], []>} : vector<8x4xf32>, vector<4x64xf32>, vector<8x64xf32> -> vector<8x64xf32>
    %cst_20 = arith.constant dense<0.000000e+00> : vector<8x64xf32>
    %20 = tpu.matmul %3, %18, %cst_20 {dimension_numbers = #tpu.dot_dimension_numbers<[1], [0], [0], [1], [0, 0, 1, 1], [], []>} : vector<8x4xf32>, vector<4x64xf32>, vector<8x64xf32> -> vector<8x64xf32>
    %21 = arith.addf %19, %20 : vector<8x64xf32>
    %22 = vector.broadcast %4 : vector<8x1xf32> to vector<8x64xf32>
    %23 = arith.mulf %21, %22 : vector<8x64xf32>
    %24 = vector.broadcast %5 : vector<8x1xf32> to vector<8x64xf32>
    %25 = arith.addf %23, %24 : vector<8x64xf32>
    %c0_21 = arith.constant 0 : index
    %c0_22 = arith.constant 0 : index
    %c0_23 = arith.constant 0 : index
    %26 = vector.load %arg8[%c0_21, %c0_22, %c0_23] : memref<1x8x64xf32, #tpu.memory_space<vmem>>, vector<1x8x64xf32>
    %27 = vector.shape_cast %26 : vector<1x8x64xf32> to vector<8x64xf32>
    %28 = vector.shape_cast %25 : vector<8x64xf32> to vector<1x8x64xf32>
    tpu.vector_store %arg8[%c0_21, %c0_22, %c0_23], %28 {strides = array<i32>} : memref<1x8x64xf32, #tpu.memory_space<vmem>>, vector<1x8x64xf32>,
    return
  }
  func.func @transform_0(%arg0: i32) -> (i32, i32, i32) {
    %c0_i32 = arith.constant 0 : i32
    %c0_i32_0 = arith.constant 0 : i32
    %c0_i32_1 = arith.constant 0 : i32
    return %arg0, %c0_i32, %c0_i32_0 : i32, i32, i32
  }
  func.func @transform_1(%arg0: i32) -> (i32, i32) {
    %c0_i32 = arith.constant 0 : i32
    %c0_i32_0 = arith.constant 0 : i32
    %c0_i32_1 = arith.constant 0 : i32
    return %c0_i32, %c0_i32_0 : i32, i32
  }
  func.func @transform_2(%arg0: i32) -> (i32, i32) {
    %c0_i32 = arith.constant 0 : i32
    %c0_i32_0 = arith.constant 0 : i32
    %c0_i32_1 = arith.constant 0 : i32
    return %c0_i32, %c0_i32_0 : i32, i32
  }
  func.func @transform_3(%arg0: i32) -> (i32, i32) {
    %c0_i32 = arith.constant 0 : i32
    %c0_i32_0 = arith.constant 0 : i32
    %c0_i32_1 = arith.constant 0 : i32
    return %c0_i32, %c0_i32_0 : i32, i32
  }
  func.func @transform_4(%arg0: i32) -> (i32, i32) {
    %c0_i32 = arith.constant 0 : i32
    %c0_i32_0 = arith.constant 0 : i32
    %c0_i32_1 = arith.constant 0 : i32
    return %c0_i32, %c0_i32_0 : i32, i32
  }
  func.func @transform_5(%arg0: i32) -> (i32, i32) {
    %c0_i32 = arith.constant 0 : i32
    %c0_i32_0 = arith.constant 0 : i32
    %c0_i32_1 = arith.constant 0 : i32
    return %c0_i32, %c0_i32_0 : i32, i32
  }
  func.func @transform_6(%arg0: i32) -> (i32, i32) {
    %c0_i32 = arith.constant 0 : i32
    %c0_i32_0 = arith.constant 0 : i32
    %c0_i32_1 = arith.constant 0 : i32
    return %c0_i32, %c0_i32_0 : i32, i32
  }
  func.func @transform_7(%arg0: i32) -> (i32, i32, i32) {
    %c0_i32 = arith.constant 0 : i32
    %c0_i32_0 = arith.constant 0 : i32
    %c0_i32_1 = arith.constant 0 : i32
    return %arg0, %c0_i32, %c0_i32_0 : i32, i32, i32
  }
}

</mosaic_0001>

<bundles_post_ra>
// kernel: factorized_reduce.2
= control target key start
LH: loop header
LB: loop body
LE: loop exit
PB: predicated region body
PF: predicated region fallthrough
CT: control target
= control target key end

     0   :  { %s873_s18 = smov 0   ;;  %s1105_s0 = inlined_call_operand.vmem [shape: f32[2,4,256], index: 0, kind: input, shape index: {}]   ;;  %s1106_s1 = inlined_call_operand.vmem [shape: f32[256,64], index: 1, kind: input, shape index: {}]   ;;  %s1107_s2 = inlined_call_operand.vmem [shape: f32[256,64], index: 2, kind: input, shape index: {}]   ;;  %s1108_s3 = inlined_call_operand.vmem [shape: f32[8,4], index: 3, kind: input, shape index: {}]   ;;  %s1109_s4 = inlined_call_operand.vmem [shape: f32[8,4], index: 4, kind: input, shape index: {}]   ;;  %s1110_s5 = inlined_call_operand.vmem [shape: f32[2,8,2], index: 5, kind: output, shape index: {}]  }
   0x1 LB: > { %s659_s19 = sadd.s32 4294967295, %s839_s18   ;;  %p663_p0 = scmp.ge.s32.totalorder %s839_s18, 1  ;;  %s839_s18 = sphi %s873_s18, %s15_s18  }
   0x2   : > { %p187_p1 = scmp.lt.s32.totalorder %s839_s18, 3 }
   0x4   : > { %p188_p2 = pnand %p663_p0, %p187_p1 }
   0x5   : > { %v239_v0 = vld [vmem:[%s1106_s1 + $0x80] sm:$0xff] (!%p188_p2)  ;;  %v240_v1 = vld [vmem:[%s1106_s1 + $0x88] sm:$0xff] (!%p188_p2)  ;;  %v241_v11 = vld [vmem:[%s1106_s1 + $0x90] sm:$0xff] (!%p188_p2)  ;;  %p955_p3 = scmp.lt.s32.totalorder (!%p188_p2), %s659_s19, 1  ;;  %vm842_vm0 = vmmov (!%p188_p2), 0   ;;  %vm442_vm1 = vcmask (!%p188_p2), 1043456  }
   0x6   : > { %191 = sbr.rel (%p188_p2) target bundleno = 620 (0x26c), region = 40  ;;  %v271_v2 = vld [vmem:[%s1107_s2 + $0x80] sm:$0xff] (!%p188_p2)  ;;  %v758_v3 = vpack.c.bf16 (!%p188_p2), %v240_v1, %v239_v0  ;;  %v272_v4 = vld [vmem:[%s1107_s2 + $0x88] sm:$0xff] (!%p188_p2)  ;;  %v242_v13 = vld [vmem:[%s1106_s1 + $0x98] sm:$0xff] (!%p188_p2)  ;;  %vm438_vm2 = vcmask (!%p188_p2), 31744   ;;  %vm592_vm3 = vcmask (!%p188_p2), 523264  }
   0x7   : > { %v223_v5 = vld [vmem:[%s1106_s1] sm:$0xff] (!%p188_p2)  ;;  %v224_v6 = vld [vmem:[%s1106_s1 + $0x8] sm:$0xff] (!%p188_p2)  ;;  %v790_v7 = vpack.c.bf16 (!%p188_p2), %v272_v4, %v271_v2  ;;  %v273_v14 = vld [vmem:[%s1107_s2 + $0x90] sm:$0xff] (!%p188_p2)  ;;  %v762_v16 = vpack.c.bf16 (!%p188_p2), %v242_v13, %v241_v11  ;;  %vm602_vm4 = vcmask (!%p188_p2), 7168   ;;  %vm604_vm5 = vcmask (!%p188_p2), 15368  }
   0x8   : > { %v760_v8 = vpack.c.bf16 (!%p188_p2), %v224_v6, %v223_v5  ;;  %v255_v9 = vld [vmem:[%s1107_s2] sm:$0xff] (!%p188_p2)  ;;  %v256_v10 = vld [vmem:[%s1107_s2 + $0x8] sm:$0xff] (!%p188_p2)  ;;  %759 = vmatprep.subr.bf16.mxu0 (!%p188_p2), %v758_v3  ;;  %v274_v15 = vld [vmem:[%s1107_s2 + $0x98] sm:$0xff] (!%p188_p2) }
   0x9   : > { %v792_v12 = vpack.c.bf16 (!%p188_p2), %v256_v10, %v255_v9  ;;  %791 = vmatprep.subr.bf16.mxu1 (!%p188_p2), %v790_v7  ;;  %v794_v17 = vpack.c.bf16 (!%p188_p2), %v274_v15, %v273_v14  ;;  %v225_v18 = vld [vmem:[%s1106_s1 + $0x10] sm:$0xff] (!%p188_p2)  ;;  %v226_v19 = vld [vmem:[%s1106_s1 + $0x18] sm:$0xff] (!%p188_p2)  ;;  %v243_v23 = vld [vmem:[%s1106_s1 + $0xa0] sm:$0xff] (!%p188_p2) }
   0xa   : > { %761 = vmatpush3.bf16.msra.mxu0 (!%p188_p2), %v760_v8  ;;  %v257_v20 = vld [vmem:[%s1107_s2 + $0x10] sm:$0xff] (!%p188_p2)  ;;  %v764_v21 = vpack.c.bf16 (!%p188_p2), %v226_v19, %v225_v18  ;;  %v258_v22 = vld [vmem:[%s1107_s2 + $0x18] sm:$0xff] (!%p188_p2)  ;;  %v244_v24 = vld [vmem:[%s1106_s1 + $0xa8] sm:$0xff] (!%p188_p2) }
   0xb   : > { %793 = vmatpush3.bf16.msra.mxu1 (!%p188_p2), %v792_v12  ;;  %763 = vmatprep.subr.bf16.mxu0 (!%p188_p2), %v762_v16  ;;  %v796_v25 = vpack.c.bf16 (!%p188_p2), %v258_v22, %v257_v20  ;;  %v766_v26 = vpack.c.bf16 (!%p188_p2), %v244_v24, %v243_v23  ;;  %v275_v27 = vld [vmem:[%s1107_s2 + $0xa0] sm:$0xff] (!%p188_p2)  ;;  %v276_v28 = vld [vmem:[%s1107_s2 + $0xa8] sm:$0xff] (!%p188_p2)  ;;  %v245_v35 = vld [vmem:[%s1106_s1 + $0xb0] sm:$0xff] (!%p188_p2) }
   0xc   : > { %795 = vmatprep.subr.bf16.mxu1 (!%p188_p2), %v794_v17  ;;  %v227_v29 = vld [vmem:[%s1106_s1 + $0x20] sm:$0xff] (!%p188_p2)  ;;  %v798_v30 = vpack.c.bf16 (!%p188_p2), %v276_v28, %v275_v27  ;;  %v228_v31 = vld [vmem:[%s1106_s1 + $0x28] sm:$0xff] (!%p188_p2)  ;;  %v246_v36 = vld [vmem:[%s1106_s1 + $0xb8] sm:$0xff] (!%p188_p2) }
   0xd   : > { %v259_v32 = vld [vmem:[%s1107_s2 + $0x20] sm:$0xff]  ;;  %v260_v33 = vld [vmem:[%s1107_s2 + $0x28] sm:$0xff]  ;;  %v768_v34 = vpack.c.bf16 %v228_v31, %v227_v29  ;;  %v277_v37 = vld [vmem:[%s1107_s2 + $0xb0] sm:$0xff]  ;;  %v770_v39 = vpack.c.bf16 %v246_v36, %v245_v35  ;;  %s1113_s19 = smov (!%p955_p3, %s659_s19), 1 }
   0xe   : > { %765 = vmatpush3.bf16.msra.mxu0 %v764_v21  ;;  %v800_v38 = vpack.c.bf16 %v260_v33, %v259_v32  ;;  %v278_v40 = vld [vmem:[%s1107_s2 + $0xb8] sm:$0xff]  ;;  %v229_v41 = vld [vmem:[%s1106_s1 + $0x30] sm:$0xff]  ;;  %v247_v46 = vld [vmem:[%s1106_s1 + $0xc0] sm:$0xff]  ;;  %s673_s15 = sshll.u32 %s1113_s19, 3 }
   0xf   : > { %797 = vmatpush3.bf16.msra.mxu1 %v796_v25  ;;  %767 = vmatprep.subr.bf16.mxu0 %v766_v26  ;;  %v230_v42 = vld [vmem:[%s1106_s1 + $0x38] sm:$0xff]  ;;  %v802_v43 = vpack.c.bf16 %v278_v40, %v277_v37  ;;  %v261_v44 = vld [vmem:[%s1107_s2 + $0x30] sm:$0xff]  ;;  %v248_v47 = vld [vmem:[%s1106_s1 + $0xc8] sm:$0xff]  ;;  %s218_s7 = scalar_lea.vmem %s1105_s0, %s673_s15  ;;  %s222_s24 = scalar_lea.vmem %s1110_s5, %s673_s15 }
  0x10   : > { %799 = vmatprep.subr.bf16.mxu1 %v798_v30  ;;  %v262_v45 = vld [vmem:[%s1107_s2 + $0x38] sm:$0xff]  ;;  %v279_v48 = vld [vmem:[%s1107_s2 + $0xc0] sm:$0xff]  ;;  %v280_v49 = vld [vmem:[%s1107_s2 + $0xc8] sm:$0xff]  ;;  %v772_v50 = vpack.c.bf16 %v230_v42, %v229_v41  ;;  %v774_v52 = vpack.c.bf16 %v248_v47, %v247_v46 }
  0x11   : > { %v804_v51 = vpack.c.bf16 %v262_v45, %v261_v44  ;;  %v231_v53 = vld [vmem:[%s1106_s1 + $0x40] sm:$0xff]  ;;  %v232_v54 = vld [vmem:[%s1106_s1 + $0x48] sm:$0xff]  ;;  %v806_v56 = vpack.c.bf16 %v280_v49, %v279_v48  ;;  %v249_v58 = vld [vmem:[%s1106_s1 + $0xd0] sm:$0xff] }
  0x12   : > { %769 = vmatpush3.bf16.msra.mxu0 %v768_v34  ;;  %v263_v55 = vld [vmem:[%s1107_s2 + $0x40] sm:$0xff]  ;;  %v264_v57 = vld [vmem:[%s1107_s2 + $0x48] sm:$0xff]  ;;  %v250_v59 = vld [vmem:[%s1106_s1 + $0xd8] sm:$0xff]  ;;  %v776_v62 = vpack.c.bf16 %v232_v54, %v231_v53 }
  0x13   : > { %801 = vmatpush3.bf16.msra.mxu1 %v800_v38  ;;  %771 = vmatprep.subr.bf16.mxu0 %v770_v39  ;;  %v281_v60 = vld [vmem:[%s1107_s2 + $0xd0] sm:$0xff]  ;;  %v282_v61 = vld [vmem:[%s1107_s2 + $0xd8] sm:$0xff]  ;;  %v808_v63 = vpack.c.bf16 %v264_v57, %v263_v55  ;;  %v778_v0 = vpack.c.bf16 %v250_v59, %v249_v58  ;;  %v251_v6 = vld [vmem:[%s1106_s1 + $0xe0] sm:$0xff]  ;;  %v841_v39 = vmov 0.0  }
  0x14   : > { %803 = vmatprep.subr.bf16.mxu1 %v802_v43  ;;  %v233_v1 = vld [vmem:[%s1106_s1 + $0x50] sm:$0xff]  ;;  %v234_v2 = vld [vmem:[%s1106_s1 + $0x58] sm:$0xff]  ;;  %v810_v4 = vpack.c.bf16 %v282_v61, %v281_v60  ;;  %v252_v7 = vld [vmem:[%s1106_s1 + $0xe8] sm:$0xff] }
  0x15   : > { %v265_v3 = vld [vmem:[%s1107_s2 + $0x50] sm:$0xff]  ;;  %v266_v5 = vld [vmem:[%s1107_s2 + $0x58] sm:$0xff]  ;;  %v283_v8 = vld [vmem:[%s1107_s2 + $0xe0] sm:$0xff]  ;;  %v780_v10 = vpack.c.bf16 %v234_v2, %v233_v1  ;;  %v782_v13 = vpack.c.bf16 %v252_v7, %v251_v6 }
  0x16   : > { %773 = vmatpush3.bf16.msra.mxu0 %v772_v50  ;;  %v284_v9 = vld [vmem:[%s1107_s2 + $0xe8] sm:$0xff]  ;;  %v235_v11 = vld [vmem:[%s1106_s1 + $0x60] sm:$0xff]  ;;  %v812_v12 = vpack.c.bf16 %v266_v5, %v265_v3  ;;  %v253_v19 = vld [vmem:[%s1106_s1 + $0xf0] sm:$0xff] }
  0x17   : > { %805 = vmatpush3.bf16.msra.mxu1 %v804_v51  ;;  %775 = vmatprep.subr.bf16.mxu0 %v774_v52  ;;  %v236_v14 = vld [vmem:[%s1106_s1 + $0x68] sm:$0xff]  ;;  %v267_v15 = vld [vmem:[%s1107_s2 + $0x60] sm:$0xff]  ;;  %v814_v17 = vpack.c.bf16 %v284_v9, %v283_v8  ;;  %v254_v20 = vld [vmem:[%s1106_s1 + $0xf8] sm:$0xff] }
  0x18   : > { %807 = vmatprep.subr.bf16.mxu1 %v806_v56  ;;  %v289_v16 = vld [vmem:[%s218_s7] sm:$0xff]  ;;  %v268_v18 = vld [vmem:[%s1107_s2 + $0x68] sm:$0xff]  ;;  %v285_v22 = vld [vmem:[%s1107_s2 + $0xf0] sm:$0xff]  ;;  %v784_v24 = vpack.c.bf16 %v236_v14, %v235_v11  ;;  %v786_v27 = vpack.c.bf16 %v254_v20, %v253_v19 }
  0x19   : > { %v290_v21 = vmax.f32 %v289_v16, 0.0  ;;  %v286_v23 = vld [vmem:[%s1107_s2 + $0xf8] sm:$0xff]  ;;  %v816_v26 = vpack.c.bf16 %v268_v18, %v267_v15  ;;  %v237_v28 = vld [vmem:[%s1106_s1 + $0x70] sm:$0xff]  ;;  %v287_v45 = vld [vmem:[%s1108_s3] sm:$0xff] }
  0x1a   : > { %777 = vmatpush3.bf16.msra.mxu0 %v776_v62  ;;  %v238_v29 = vld [vmem:[%s1106_s1 + $0x78] sm:$0xff]  ;;  %v818_v30 = vpack.c.bf16 %v286_v23, %v285_v22  ;;  %v269_v31 = vld [vmem:[%s1107_s2 + $0x70] sm:$0xff]  ;;  %v288_v47 = vld [vmem:[%s1109_s4] sm:$0xff] }
  0x1b   : > { %809 = vmatpush3.bf16.msra.mxu1 %v808_v63  ;;  %779 = vmatprep.subr.bf16.mxu0 %v778_v0  ;;  %v291_v25 = vmul.f32 65536.0, %v290_v21  ;;  %v270_v32 = vld [vmem:[%s1107_s2 + $0x78] sm:$0xff]  ;;  %v788_v34 = vpack.c.bf16 %v238_v29, %v237_v28 }
  0x1c   : > { %811 = vmatprep.subr.bf16.mxu1 %v810_v4  ;;  %v820_v36 = vpack.c.bf16 %v270_v32, %v269_v31 }
  0x1d   : > { %v292_v33 = vfloor.f32 %v291_v25 }
  0x1e   : > { %781 = vmatpush3.bf16.msra.mxu0 %v780_v10 }
  0x1f   : > { %813 = vmatpush3.bf16.msra.mxu1 %v812_v12  ;;  %783 = vmatprep.subr.bf16.mxu0 %v782_v13  ;;  %v293_v35 = vmul.f32 1.5258789e-05, %v292_v33 }
  0x20   : > { %815 = vmatprep.subr.bf16.mxu1 %v814_v17 }
  0x21   : > { %v294_v37 = vmin.f32 %v293_v35, 32767.0 }
  0x22   : > { %785 = vmatpush3.bf16.msra.mxu0 %v784_v24 }
  0x23   : > { %817 = vmatpush3.bf16.msra.mxu1 %v816_v26  ;;  %787 = vmatprep.subr.bf16.mxu0 %v786_v27  ;;  %v296_v38 = vcombine.high %v294_v37, %v294_v37 }
  0x24   : > { %819 = vmatprep.subr.bf16.mxu1 %v818_v30 }
  0x25   : > { %362 = vmatprep.mubr.f32.mxu0 %v296_v38  ;;  %432 = vmatprep.mubr.f32.mxu1 %v296_v38 }
  0x26   : > { %789 = vmatpush3.bf16.msra.mxu0 %v788_v34 }
  0x27   : > { %821 = vmatpush3.bf16.msra.mxu1 %v820_v36  ;;  %753 = vmatprep.subr.mxu0 %v841_v39 }
  0x28   : > { %748 = vmatprep.subr.mxu1 %v841_v39 }
  0x29   : > { %363 = vmatmul.mubr.f32.vlgmr.msra.gmra.mrb[0].mxu0 %v294_v37 }
  0x2a   : > { %433 = vmatmul.mubr.f32.vlgmr.msra.gmra.mrb[0].mxu1 %v294_v37  ;;  %755 = vmatprep.mubr.msk.f32.mxu0 %vm842_vm0, %v841_v39 }
  0x2b   : > { %750 = vmatprep.mubr.msk.f32.mxu1 %vm842_vm0, %v841_v39 }
  0xfc   : > { %v706_v40 = vpop.f32.mrb[0].mxu0 }
  0xfd   : > { %v741_v41 = vpop.f32.mrb[0].mxu1  ;;  %v707_v42 = vpop.f32.mrb[1].mxu0 }
  0xfe   : > { %v708_v43 = vadd.f32 %v707_v42, %v706_v40  ;;  %v742_v44 = vpop.f32.mrb[1].mxu1 }
  0xff   : > { %v743_v46 = vadd.f32 %v742_v44, %v741_v41 }
 0x100   : > { %754 = vmatpush3.msk.msra.mxu0 %vm442_vm1, %v708_v43 }
 0x101   : > { %749 = vmatpush3.msk.msra.mxu1 %vm442_vm1, %v743_v46  ;;  %756 = vmatmul.mubr.msk.f32.vlgmr.msra.gmra.mrb[2].mxu0 %vm438_vm2, %v287_v45 }
 0x102   : > { %751 = vmatmul.mubr.msk.f32.vlgmr.msra.gmra.mrb[2].mxu1 %vm438_vm2, %v288_v47 }
 0x1d4   : > { %v588_v48 = vpop.f32.mrb[2].mxu0 }
 0x1d5   : > { %v512_v49 = vpop.f32.mrb[2].mxu1  ;;  %v757_v50 = vpop.f32.mrb[3].mxu0 }
 0x1d6   : > { %v589_v51 = vadd.f32 %v588_v48, %v512_v49  ;;  %v752_v52 = vpop.f32.mrb[3].mxu1 }
 0x1d8   : > { %v593_v53 = vsel %vm592_vm3, %v589_v51, 0.0  ;;  %v597_v54 = vmul.f32 %v589_v51, %v589_v51 }
 0x1d9   : > { %594 = vadd.xlane.f32.xlu0 %v593_v53 }
 0x1da   : > { %v598_v55 = vsel %vm592_vm3, %v597_v54, 0.0 }
 0x1dd   : > { %599 = vadd.xlane.f32.xlu0 %v598_v55 }
 0x266   : > { %v595_v56 = vpop.xlane.xlu0 %594 }
 0x267   : > { %603 = vst.msk [vmem:[%s222_s24] sm:$0xff] %vm602_vm4, %v595_v56 }
 0x26a   : > { %v600_v57 = vpop.xlane.xlu0 %599 }
 0x26b   : > { %605 = vst.msk [vmem:[%s222_s24] sm:$0xff] %vm604_vm5, %v600_v57 }
 0x26c PF: > { %s15_s18 = sadd.s32 1, %s839_s18  }
 0x26d   : > { %p12_p4 = scmp.ge.s32.totalorder %s15_s18, 4  }
 0x26f   :  { %14 = sbr.rel (!%p12_p4) target bundleno = 1 (0x1), region = 70 }

// kernel: factorized_reduce.3
= control target key start
LH: loop header
LB: loop body
LE: loop exit
PB: predicated region body
PF: predicated region fallthrough
CT: control target
= control target key end

     0   :  { %s942_s24 = smov 0   ;;  %s1180_s0 = inlined_call_operand.vmem [shape: f32[2,4,256], index: 0, kind: input, shape index: {}]   ;;  %s1181_s1 = inlined_call_operand.vmem [shape: f32[256,64], index: 1, kind: input, shape index: {}]   ;;  %s1182_s2 = inlined_call_operand.vmem [shape: f32[256,64], index: 2, kind: input, shape index: {}]   ;;  %s1183_s3 = inlined_call_operand.vmem [shape: f32[8,4], index: 3, kind: input, shape index: {}]   ;;  %s1184_s4 = inlined_call_operand.vmem [shape: f32[8,4], index: 4, kind: input, shape index: {}]   ;;  %s1185_s5 = inlined_call_operand.vmem [shape: f32[8,1], index: 5, kind: input, shape index: {}]   ;;  %s1186_s6 = inlined_call_operand.vmem [shape: f32[8,1], index: 6, kind: input, shape index: {}]   ;;  %s1187_s7 = inlined_call_operand.vmem [shape: f32[2,8,64], index: 7, kind: output, shape index: {}]  }
   0x1 LB: > { %s715_s25 = sadd.s32 4294967295, %s897_s24   ;;  %p719_p0 = scmp.ge.s32.totalorder %s897_s24, 1  ;;  %s897_s24 = sphi %s942_s24, %s17_s24  }
   0x2   : > { %p237_p1 = scmp.lt.s32.totalorder %s897_s24, 3 }
   0x4   : > { %p238_p2 = pnand %p719_p0, %p237_p1 }
   0x5   : > { %v293_v0 = vld [vmem:[%s1181_s1 + $0x80] sm:$0xff] (!%p238_p2)  ;;  %v294_v1 = vld [vmem:[%s1181_s1 + $0x88] sm:$0xff] (!%p238_p2)  ;;  %v295_v11 = vld [vmem:[%s1181_s1 + $0x90] sm:$0xff] (!%p238_p2)  ;;  %p1024_p3 = scmp.lt.s32.totalorder (!%p238_p2), %s715_s25, 1  ;;  %vm900_vm0 = vmmov (!%p238_p2), 0   ;;  %vm498_vm1 = vcmask (!%p238_p2), 1043456  }
   0x6   : > { %241 = sbr.rel (%p238_p2) target bundleno = 477 (0x1dd), region = 48  ;;  %v325_v2 = vld [vmem:[%s1182_s2 + $0x80] sm:$0xff] (!%p238_p2)  ;;  %v814_v3 = vpack.c.bf16 (!%p238_p2), %v294_v1, %v293_v0  ;;  %v326_v4 = vld [vmem:[%s1182_s2 + $0x88] sm:$0xff] (!%p238_p2)  ;;  %v296_v13 = vld [vmem:[%s1181_s1 + $0x98] sm:$0xff] (!%p238_p2)  ;;  %vm494_vm2 = vcmask (!%p238_p2), 31744   ;;  %vm660_vm3 = vcmask (!%p238_p2), 523264  }
   0x7   : > { %v277_v5 = vld [vmem:[%s1181_s1] sm:$0xff] (!%p238_p2)  ;;  %v278_v6 = vld [vmem:[%s1181_s1 + $0x8] sm:$0xff] (!%p238_p2)  ;;  %v846_v7 = vpack.c.bf16 (!%p238_p2), %v326_v4, %v325_v2  ;;  %v327_v14 = vld [vmem:[%s1182_s2 + $0x90] sm:$0xff] (!%p238_p2)  ;;  %v818_v16 = vpack.c.bf16 (!%p238_p2), %v296_v13, %v295_v11 }
   0x8   : > { %v816_v8 = vpack.c.bf16 (!%p238_p2), %v278_v6, %v277_v5  ;;  %v309_v9 = vld [vmem:[%s1182_s2] sm:$0xff] (!%p238_p2)  ;;  %v310_v10 = vld [vmem:[%s1182_s2 + $0x8] sm:$0xff] (!%p238_p2)  ;;  %815 = vmatprep.subr.bf16.mxu0 (!%p238_p2), %v814_v3  ;;  %v328_v15 = vld [vmem:[%s1182_s2 + $0x98] sm:$0xff] (!%p238_p2) }
   0x9   : > { %v848_v12 = vpack.c.bf16 (!%p238_p2), %v310_v10, %v309_v9  ;;  %847 = vmatprep.subr.bf16.mxu1 (!%p238_p2), %v846_v7  ;;  %v850_v17 = vpack.c.bf16 (!%p238_p2), %v328_v15, %v327_v14  ;;  %v279_v18 = vld [vmem:[%s1181_s1 + $0x10] sm:$0xff] (!%p238_p2)  ;;  %v280_v19 = vld [vmem:[%s1181_s1 + $0x18] sm:$0xff] (!%p238_p2)  ;;  %v297_v23 = vld [vmem:[%s1181_s1 + $0xa0] sm:$0xff] (!%p238_p2) }
   0xa   : > { %817 = vmatpush3.bf16.msra.mxu0 (!%p238_p2), %v816_v8  ;;  %v311_v20 = vld [vmem:[%s1182_s2 + $0x10] sm:$0xff] (!%p238_p2)  ;;  %v820_v21 = vpack.c.bf16 (!%p238_p2), %v280_v19, %v279_v18  ;;  %v312_v22 = vld [vmem:[%s1182_s2 + $0x18] sm:$0xff] (!%p238_p2)  ;;  %v298_v24 = vld [vmem:[%s1181_s1 + $0xa8] sm:$0xff] (!%p238_p2) }
   0xb   : > { %849 = vmatpush3.bf16.msra.mxu1 (!%p238_p2), %v848_v12  ;;  %819 = vmatprep.subr.bf16.mxu0 (!%p238_p2), %v818_v16  ;;  %v852_v25 = vpack.c.bf16 (!%p238_p2), %v312_v22, %v311_v20  ;;  %v822_v26 = vpack.c.bf16 (!%p238_p2), %v298_v24, %v297_v23  ;;  %v329_v27 = vld [vmem:[%s1182_s2 + $0xa0] sm:$0xff] (!%p238_p2)  ;;  %v330_v28 = vld [vmem:[%s1182_s2 + $0xa8] sm:$0xff] (!%p238_p2)  ;;  %v299_v35 = vld [vmem:[%s1181_s1 + $0xb0] sm:$0xff] (!%p238_p2) }
   0xc   : > { %851 = vmatprep.subr.bf16.mxu1 (!%p238_p2), %v850_v17  ;;  %v281_v29 = vld [vmem:[%s1181_s1 + $0x20] sm:$0xff] (!%p238_p2)  ;;  %v854_v30 = vpack.c.bf16 (!%p238_p2), %v330_v28, %v329_v27  ;;  %v282_v31 = vld [vmem:[%s1181_s1 + $0x28] sm:$0xff] (!%p238_p2)  ;;  %v300_v36 = vld [vmem:[%s1181_s1 + $0xb8] sm:$0xff] (!%p238_p2) }
   0xd   : > { %v313_v32 = vld [vmem:[%s1182_s2 + $0x20] sm:$0xff]  ;;  %v314_v33 = vld [vmem:[%s1182_s2 + $0x28] sm:$0xff]  ;;  %v824_v34 = vpack.c.bf16 %v282_v31, %v281_v29  ;;  %v331_v37 = vld [vmem:[%s1182_s2 + $0xb0] sm:$0xff]  ;;  %v826_v39 = vpack.c.bf16 %v300_v36, %v299_v35  ;;  %s1190_s25 = smov (!%p1024_p3, %s715_s25), 1 }
   0xe   : > { %821 = vmatpush3.bf16.msra.mxu0 %v820_v21  ;;  %v856_v38 = vpack.c.bf16 %v314_v33, %v313_v32  ;;  %v332_v40 = vld [vmem:[%s1182_s2 + $0xb8] sm:$0xff]  ;;  %v283_v41 = vld [vmem:[%s1181_s1 + $0x30] sm:$0xff]  ;;  %v301_v46 = vld [vmem:[%s1181_s1 + $0xc0] sm:$0xff]  ;;  %s729_s8 = sshll.u32 %s1190_s25, 3 }
   0xf   : > { %853 = vmatpush3.bf16.msra.mxu1 %v852_v25  ;;  %823 = vmatprep.subr.bf16.mxu0 %v822_v26  ;;  %v284_v42 = vld [vmem:[%s1181_s1 + $0x38] sm:$0xff]  ;;  %v858_v43 = vpack.c.bf16 %v332_v40, %v331_v37  ;;  %v315_v44 = vld [vmem:[%s1182_s2 + $0x30] sm:$0xff]  ;;  %v302_v47 = vld [vmem:[%s1181_s1 + $0xc8] sm:$0xff]  ;;  %s272_s23 = scalar_lea.vmem %s1180_s0, %s729_s8  ;;  %s276_s22 = scalar_lea.vmem %s1187_s7, %s729_s8 }
  0x10   : > { %855 = vmatprep.subr.bf16.mxu1 %v854_v30  ;;  %v316_v45 = vld [vmem:[%s1182_s2 + $0x38] sm:$0xff]  ;;  %v333_v48 = vld [vmem:[%s1182_s2 + $0xc0] sm:$0xff]  ;;  %v334_v49 = vld [vmem:[%s1182_s2 + $0xc8] sm:$0xff]  ;;  %v828_v50 = vpack.c.bf16 %v284_v42, %v283_v41  ;;  %v830_v52 = vpack.c.bf16 %v302_v47, %v301_v46  ;;  %v901_v41 = vmov 0  }
  0x11   : > { %v860_v51 = vpack.c.bf16 %v316_v45, %v315_v44  ;;  %v285_v53 = vld [vmem:[%s1181_s1 + $0x40] sm:$0xff]  ;;  %v286_v54 = vld [vmem:[%s1181_s1 + $0x48] sm:$0xff]  ;;  %v862_v56 = vpack.c.bf16 %v334_v49, %v333_v48  ;;  %v303_v58 = vld [vmem:[%s1181_s1 + $0xd0] sm:$0xff]  ;;  %890 = vset.pattern.permute.xlu0 %v901_v41 }
  0x12   : > { %825 = vmatpush3.bf16.msra.mxu0 %v824_v34  ;;  %v317_v55 = vld [vmem:[%s1182_s2 + $0x40] sm:$0xff]  ;;  %v318_v57 = vld [vmem:[%s1182_s2 + $0x48] sm:$0xff]  ;;  %v304_v59 = vld [vmem:[%s1181_s1 + $0xd8] sm:$0xff]  ;;  %v832_v62 = vpack.c.bf16 %v286_v54, %v285_v53 }
  0x13   : > { %857 = vmatpush3.bf16.msra.mxu1 %v856_v38  ;;  %827 = vmatprep.subr.bf16.mxu0 %v826_v39  ;;  %v335_v60 = vld [vmem:[%s1182_s2 + $0xd0] sm:$0xff]  ;;  %v336_v61 = vld [vmem:[%s1182_s2 + $0xd8] sm:$0xff]  ;;  %v864_v63 = vpack.c.bf16 %v318_v57, %v317_v55  ;;  %v834_v0 = vpack.c.bf16 %v304_v59, %v303_v58  ;;  %v305_v6 = vld [vmem:[%s1181_s1 + $0xe0] sm:$0xff]  ;;  %v899_v39 = vmov 0.0  }
  0x14   : > { %859 = vmatprep.subr.bf16.mxu1 %v858_v43  ;;  %v287_v1 = vld [vmem:[%s1181_s1 + $0x50] sm:$0xff]  ;;  %v288_v2 = vld [vmem:[%s1181_s1 + $0x58] sm:$0xff]  ;;  %v866_v4 = vpack.c.bf16 %v336_v61, %v335_v60  ;;  %v306_v7 = vld [vmem:[%s1181_s1 + $0xe8] sm:$0xff] }
  0x15   : > { %v319_v3 = vld [vmem:[%s1182_s2 + $0x50] sm:$0xff]  ;;  %v320_v5 = vld [vmem:[%s1182_s2 + $0x58] sm:$0xff]  ;;  %v337_v8 = vld [vmem:[%s1182_s2 + $0xe0] sm:$0xff]  ;;  %v836_v10 = vpack.c.bf16 %v288_v2, %v287_v1  ;;  %v838_v13 = vpack.c.bf16 %v306_v7, %v305_v6 }
  0x16   : > { %829 = vmatpush3.bf16.msra.mxu0 %v828_v50  ;;  %v338_v9 = vld [vmem:[%s1182_s2 + $0xe8] sm:$0xff]  ;;  %v289_v11 = vld [vmem:[%s1181_s1 + $0x60] sm:$0xff]  ;;  %v868_v12 = vpack.c.bf16 %v320_v5, %v319_v3  ;;  %v307_v19 = vld [vmem:[%s1181_s1 + $0xf0] sm:$0xff] }
  0x17   : > { %861 = vmatpush3.bf16.msra.mxu1 %v860_v51  ;;  %831 = vmatprep.subr.bf16.mxu0 %v830_v52  ;;  %v290_v14 = vld [vmem:[%s1181_s1 + $0x68] sm:$0xff]  ;;  %v321_v15 = vld [vmem:[%s1182_s2 + $0x60] sm:$0xff]  ;;  %v870_v17 = vpack.c.bf16 %v338_v9, %v337_v8  ;;  %v308_v20 = vld [vmem:[%s1181_s1 + $0xf8] sm:$0xff] }
  0x18   : > { %863 = vmatprep.subr.bf16.mxu1 %v862_v56  ;;  %v345_v16 = vld [vmem:[%s272_s23] sm:$0xff]  ;;  %v322_v18 = vld [vmem:[%s1182_s2 + $0x68] sm:$0xff]  ;;  %v339_v22 = vld [vmem:[%s1182_s2 + $0xf0] sm:$0xff]  ;;  %v840_v24 = vpack.c.bf16 %v290_v14, %v289_v11  ;;  %v842_v27 = vpack.c.bf16 %v308_v20, %v307_v19 }
  0x19   : > { %v346_v21 = vmax.f32 %v345_v16, 0.0  ;;  %v340_v23 = vld [vmem:[%s1182_s2 + $0xf8] sm:$0xff]  ;;  %v872_v26 = vpack.c.bf16 %v322_v18, %v321_v15  ;;  %v291_v28 = vld [vmem:[%s1181_s1 + $0x70] sm:$0xff]  ;;  %v343_v40 = vld [vmem:[%s1185_s5] sm:$0xff] }
  0x1a   : > { %833 = vmatpush3.bf16.msra.mxu0 %v832_v62  ;;  %v292_v29 = vld [vmem:[%s1181_s1 + $0x78] sm:$0xff]  ;;  %v874_v30 = vpack.c.bf16 %v340_v23, %v339_v22  ;;  %v323_v31 = vld [vmem:[%s1182_s2 + $0x70] sm:$0xff]  ;;  %650 = vperm.xlu0 %890, %v343_v40   ;;  %v344_v42 = vld [vmem:[%s1186_s6] sm:$0xff] }
  0x1b   : > { %865 = vmatpush3.bf16.msra.mxu1 %v864_v63  ;;  %835 = vmatprep.subr.bf16.mxu0 %v834_v0  ;;  %v347_v25 = vmul.f32 65536.0, %v346_v21  ;;  %v324_v32 = vld [vmem:[%s1182_s2 + $0x78] sm:$0xff]  ;;  %v844_v34 = vpack.c.bf16 %v292_v29, %v291_v28  ;;  %v341_v48 = vld [vmem:[%s1183_s3] sm:$0xff] }
  0x1c   : > { %867 = vmatprep.subr.bf16.mxu1 %v866_v4  ;;  %v876_v36 = vpack.c.bf16 %v324_v32, %v323_v31  ;;  %v342_v50 = vld [vmem:[%s1184_s4] sm:$0xff] }
  0x1d   : > { %v348_v33 = vfloor.f32 %v347_v25 }
  0x1e   : > { %837 = vmatpush3.bf16.msra.mxu0 %v836_v10  ;;  %656 = vperm.xlu0 %890, %v344_v42  }
  0x1f   : > { %869 = vmatpush3.bf16.msra.mxu1 %v868_v12  ;;  %839 = vmatprep.subr.bf16.mxu0 %v838_v13  ;;  %v349_v35 = vmul.f32 1.5258789e-05, %v348_v33 }
  0x20   : > { %871 = vmatprep.subr.bf16.mxu1 %v870_v17 }
  0x21   : > { %v350_v37 = vmin.f32 %v349_v35, 32767.0 }
  0x22   : > { %841 = vmatpush3.bf16.msra.mxu0 %v840_v24 }
  0x23   : > { %873 = vmatpush3.bf16.msra.mxu1 %v872_v26  ;;  %843 = vmatprep.subr.bf16.mxu0 %v842_v27  ;;  %v352_v38 = vcombine.high %v350_v37, %v350_v37 }
  0x24   : > { %875 = vmatprep.subr.bf16.mxu1 %v874_v30 }
  0x25   : > { %418 = vmatprep.mubr.f32.mxu0 %v352_v38  ;;  %488 = vmatprep.mubr.f32.mxu1 %v352_v38 }
  0x26   : > { %845 = vmatpush3.bf16.msra.mxu0 %v844_v34 }
  0x27   : > { %877 = vmatpush3.bf16.msra.mxu1 %v876_v36  ;;  %809 = vmatprep.subr.mxu0 %v899_v39 }
  0x28   : > { %804 = vmatprep.subr.mxu1 %v899_v39 }
  0x29   : > { %419 = vmatmul.mubr.f32.vlgmr.msra.gmra.mrb[0].mxu0 %v350_v37 }
  0x2a   : > { %489 = vmatmul.mubr.f32.vlgmr.msra.gmra.mrb[0].mxu1 %v350_v37  ;;  %811 = vmatprep.mubr.msk.f32.mxu0 %vm900_vm0, %v899_v39 }
  0x2b   : > { %806 = vmatprep.mubr.msk.f32.mxu1 %vm900_vm0, %v899_v39 }
  0x99   : > { %v651_v51 = vpop.permute.xlu0 %650 }
  0x9d   : > { %v657_v58 = vpop.permute.xlu0 %656 }
  0xfc   : > { %v762_v43 = vpop.f32.mrb[0].mxu0 }
  0xfd   : > { %v797_v44 = vpop.f32.mrb[0].mxu1  ;;  %v763_v45 = vpop.f32.mrb[1].mxu0 }
  0xfe   : > { %v764_v46 = vadd.f32 %v763_v45, %v762_v43  ;;  %v798_v47 = vpop.f32.mrb[1].mxu1 }
  0xff   : > { %v799_v49 = vadd.f32 %v798_v47, %v797_v44 }
 0x100   : > { %810 = vmatpush3.msk.msra.mxu0 %vm498_vm1, %v764_v46 }
 0x101   : > { %805 = vmatpush3.msk.msra.mxu1 %vm498_vm1, %v799_v49  ;;  %812 = vmatmul.mubr.msk.f32.vlgmr.msra.gmra.mrb[2].mxu0 %vm494_vm2, %v341_v48 }
 0x102   : > { %807 = vmatmul.mubr.msk.f32.vlgmr.msra.gmra.mrb[2].mxu1 %vm494_vm2, %v342_v50 }
 0x1d4   : > { %v644_v52 = vpop.f32.mrb[2].mxu0 }
 0x1d5   : > { %v568_v53 = vpop.f32.mrb[2].mxu1  ;;  %v813_v54 = vpop.f32.mrb[3].mxu0 }
 0x1d6   : > { %v645_v55 = vadd.f32 %v644_v52, %v568_v53  ;;  %v808_v56 = vpop.f32.mrb[3].mxu1 }
 0x1d8   : > { %v653_v57 = vmul.f32 %v651_v51, %v645_v55 }
 0x1da   : > { %v659_v59 = vadd.f32 %v657_v58, %v653_v57 }
 0x1dc   : > { %661 = vst.msk [vmem:[%s276_s22] sm:$0xff] %vm660_vm3, %v659_v59 }
 0x1dd PF: > { %s17_s24 = sadd.s32 1, %s897_s24  }
 0x1de   : > { %p14_p4 = scmp.ge.s32.totalorder %s17_s24, 4  }
 0x1e0   :  { %16 = sbr.rel (!%p14_p4) target bundleno = 1 (0x1), region = 78 }

</bundles_post_ra>
